<compile_context>
chip_gen: v5e
topology: v5e:2x2
jax: 0.10.0
libtpu: 0.0.40
codegen_flags: <defaults>
</compile_context>

<pallas_src>
import functools

import jax
import jax.numpy as jnp
from jax.experimental import pallas as pl
from jax.experimental.pallas import tpu as pltpu


# ----------------------------------------------------------------------------
# Kernel
# ----------------------------------------------------------------------------
def _ed_head_kernel(x_ref, w1_ref, b1_ref, w2_ref, b2_ref, w3_ref, b3_ref,
                    o_ref):
    # Compute dtype follows the weights (bf16 fast path or exact f32 path).
    cdt = w1_ref.dtype
    x = x_ref[...].astype(cdt)          # in-kernel cast; no-op for f32 weights

    # linear1 + relu   (MXU matmul, f32 accumulate; bias added at f32)
    h = jnp.dot(x, w1_ref[...], preferred_element_type=jnp.float32)
    h = jnp.maximum(h + b1_ref[...].astype(jnp.float32), 0.0)

    # dropout (eval mode) -> identity

    # linear2 + relu
    h = jnp.dot(h.astype(cdt), w2_ref[...], preferred_element_type=jnp.float32)
    h = jnp.maximum(h + b2_ref[...].astype(jnp.float32), 0.0)

    # dropout (eval mode) -> identity

    # linear4 + tanh  (tanh lands on the EUP slot)
    h = jnp.dot(h.astype(cdt), w3_ref[...], preferred_element_type=jnp.float32)
    h = jnp.tanh(h + b3_ref[...].astype(jnp.float32))

    o_ref[...] = h.astype(o_ref.dtype)


# ----------------------------------------------------------------------------
# Sizing helpers
# ----------------------------------------------------------------------------
def _round_up(x, m):
    return ((x + m - 1) // m) * m


def _tpu_generation_info():
    """Return (physical VMEM bytes per TensorCore, TCs sharing the grid)."""
    kind = ""
    try:
        kind = jax.devices()[0].device_kind.lower()
    except Exception:  # pragma: no cover
        pass
    is_v7 = ("v7" in kind) or ("7x" in kind)

    vmem = None
    try:
        vmem = int(getattr(pltpu.get_tpu_info(), "vmem_capacity_bytes"))
    except Exception:  # pragma: no cover
        vmem = None
    if vmem is None or vmem <= 0:
        vmem = (64 << 20) if is_v7 else (128 << 20)

    num_cores = 2 if is_v7 else 1
    return vmem, num_cores


def _pick_tile_m(M, per_row_bytes, avail_bytes, tile_cap, num_cores, align):
    """Largest aligned row tile that fits the per-step VMEM budget.

    On 2-TC chips (v7x) additionally prefer an even step count (>= 2) so both
    TensorCores get balanced work on the 'parallel' axis.  On 1-TC chips the
    grid is a serial loop, so no forced split (it would only add per-step
    pipeline overhead).
    """
    if M <= align:
        return M
    fit = max(align, int(avail_bytes // max(per_row_bytes, 1)))
    tm = min(tile_cap, fit)
    tm = max(align, (tm // align) * align)
    if tm >= M:
        tm = M
    if num_cores > 1:
        steps = -(-M // tm)
        if steps < 2 or steps % 2:
            target = max(2, steps + (steps % 2))     # next even step count
            tm2 = max(align, _round_up(-(-M // target), align))
            if (-(-M // tm2)) % 2 == 0:
                tm = min(tm, tm2)
    return tm


# ----------------------------------------------------------------------------
# Public entry points
# ----------------------------------------------------------------------------
def prepare_params(params, use_bf16=True):
    """One-time parameter prep for the fused kernel (call OUTSIDE the hot path).

    Weights -> MXU compute dtype (bf16 fast path by default; strongly
    preferred on v5e where f32 matmul is emulated).  Biases -> f32 so the
    bias add happens at accumulator precision.  Doing this once avoids
    re-casting / re-writing the weights to HBM on every forward call.
    """
    cdt = jnp.bfloat16 if use_bf16 else jnp.float32
    return {
        "w1": params["w1"].astype(cdt), "b1": params["b1"].astype(jnp.float32),
        "w2": params["w2"].astype(cdt), "b2": params["b2"].astype(jnp.float32),
        "w3": params["w3"].astype(cdt), "b3": params["b3"].astype(jnp.float32),
    }


@functools.partial(jax.jit,
                   static_argnames=("tile_m", "out_dtype", "x_buffers"))
def entity_disambiguation_head(input_vals, params, *, tile_m=None,
                               out_dtype=None, x_buffers=2):
    """input_vals: [batch, seq, embed]. Returns [batch, seq, entity_embed_dim].

    `params` should come from `init_params` (exact f32 path) or
    `prepare_params` (bf16 fast path).  `out_dtype=jnp.bfloat16` halves
    output writeback if downstream accepts it.
    """
    w1, b1, w2, b2, w3, b3 = (params["w1"], params["b1"], params["w2"],
                              params["b2"], params["w3"], params["b3"])
    B, S, E = input_vals.shape
    H1 = w1.shape[1]
    H2 = w2.shape[1]
    De = w3.shape[1]
    M = B * S

    x2d = input_vals.reshape(M, E)                 # layout only, no dtype cast
    b1f = b1.reshape(1, H1).astype(jnp.float32)    # no-ops if already prepared
    b2f = b2.reshape(1, H2).astype(jnp.float32)
    b3f = b3.reshape(1, De).astype(jnp.float32)

    x_dt = x2d.dtype
    o_dt = jnp.dtype(out_dtype) if out_dtype is not None else x_dt
    x_bytes = jnp.dtype(x_dt).itemsize
    w_bytes = jnp.dtype(w1.dtype).itemsize
    out_bytes = jnp.dtype(o_dt).itemsize

    # ---- generation-aware VMEM budget / tile cap ----
    vmem_phys, num_cores = _tpu_generation_info()
    if vmem_phys <= (64 << 20):            # v7x-class: 64 MiB VMEM, 2 TCs
        budget, clamp, tile_cap = 40 << 20, 56 << 20, 1024
    else:                                  # v5e / v6e: 128 MiB VMEM, 1 TC
        budget, clamp, tile_cap = 88 << 20, 100 << 20, 4096

    # Resident (single-buffered via pl.Buffered(1)) weights + biases.
    w_bytes_total = (E * H1 + H1 * H2 + H2 * De) * w_bytes
    b_bytes_total = (H1 + H2 + De) * 4
    resident = w_bytes_total + b_bytes_total

    # Per-row tile footprint: x (x_buffers-deep), out (double-buffered),
    # f32 intermediates h1/h2/h3, plus one compute-dtype cast copy.
    per_row = (x_buffers * E * x_bytes
               + 2 * De * out_bytes
               + (H1 + H2 + De) * 4
               + max(E, H1, H2) * w_bytes)

    align = 16 if min(x_bytes, out_bytes) == 2 else 8
    avail = max(budget - resident, per_row * align)

    if tile_m is not None:
        tm = min(int(tile_m), M)
        if tm < M:
            tm = max(align, (tm // align) * align)
    else:
        tm = _pick_tile_m(M, per_row, avail, tile_cap, num_cores, align)

    grid = (pl.cdiv(M, tm),)

    vmem_est = resident + tm * per_row
    vmem_limit = int(min(max(vmem_est + (8 << 20), 32 << 20), clamp))

    flops = 2 * M * (E * H1 + H1 * H2 + H2 * De)
    bytes_accessed = (M * E * x_bytes + M * De * out_bytes
                      + w_bytes_total + b_bytes_total)
    cost = pl.CostEstimate(flops=flops,
                           transcendentals=M * De,
                           bytes_accessed=bytes_accessed)

    out = pl.pallas_call(
        _ed_head_kernel,
        out_shape=jax.ShapeDtypeStruct((M, De), o_dt),
        grid_spec=pltpu.PrefetchScalarGridSpec(
            num_scalar_prefetch=0,
            grid=grid,
            in_specs=[
                # x rows: the only streamed operand.
                pl.BlockSpec((tm, E), lambda i: (i, 0),
                             pipeline_mode=pl.Buffered(x_buffers)),
                # Weights / biases: constant index_map -> VMEM resident;
                # single-buffered to halve their VMEM footprint.
                pl.BlockSpec((E, H1), lambda i: (0, 0),
                             pipeline_mode=pl.Buffered(1)),
                pl.BlockSpec((1, H1), lambda i: (0, 0),
                             pipeline_mode=pl.Buffered(1)),
                pl.BlockSpec((H1, H2), lambda i: (0, 0),
                             pipeline_mode=pl.Buffered(1)),
                pl.BlockSpec((1, H2), lambda i: (0, 0),
                             pipeline_mode=pl.Buffered(1)),
                pl.BlockSpec((H2, De), lambda i: (0, 0),
                             pipeline_mode=pl.Buffered(1)),
                pl.BlockSpec((1, De), lambda i: (0, 0),
                             pipeline_mode=pl.Buffered(1)),
            ],
            out_specs=pl.BlockSpec((tm, De), lambda i: (i, 0)),
        ),
        compiler_params=pltpu.CompilerParams(
            dimension_semantics=("parallel",),
            vmem_limit_bytes=vmem_limit),
        cost_estimate=cost,
    )(x2d, w1, b1f, w2, b2f, w3, b3f)

    return out.reshape(B, S, De)


def init_params(key, input_dim, entity_embed_dim, hidden=256,
                dtype=jnp.float32):
    """Deterministic synthetic init (uniform ~ PyTorch Linear default range)."""
    ks = jax.random.split(key, 6)

    def lin(kw, kb, fan_in, fan_out):
        bound = 1.0 / jnp.sqrt(fan_in)
        w = jax.random.uniform(kw, (fan_in, fan_out), dtype, -bound, bound)
        b = jax.random.uniform(kb, (1, fan_out), dtype, -bound, bound)
        return w, b

    w1, b1 = lin(ks[0], ks[1], input_dim, hidden)
    w2, b2 = lin(ks[2], ks[3], hidden, hidden)
    w3, b3 = lin(ks[4], ks[5], hidden, entity_embed_dim)
    return dict(w1=w1, b1=b1, w2=w2, b2=b2, w3=w3, b3=b3)


if __name__ == "__main__":
    key = jax.random.PRNGKey(0)
    k_emb, k_x, k_p = jax.random.split(key, 3)

    # Small shapes consistent with the module.
    batch, seq, input_dim = 2, 8, 32
    entity_universe_size, entity_embed_dim = 100, 64

    # entity_embedding only contributes its embed dim to the head.
    entity_embedding = jax.random.normal(
        k_emb, (entity_universe_size, entity_embed_dim), jnp.float32)

    params = init_params(k_p, input_dim, entity_embedding.shape[1])
    x = jax.random.normal(k_x, (batch, seq, input_dim), jnp.float32)

    # Reference in plain JAX (eval-mode dropout = identity).
    def ref(x, p):
        h = jnp.maximum(x @ p["w1"] + p["b1"][0], 0.0)
        h = jnp.maximum(h @ p["w2"] + p["b2"][0], 0.0)
        return jnp.tanh(h @ p["w3"] + p["b3"][0])

    expected = ref(x, params)

    # Exact-precision path: raw f32 params straight through (no casts at all).
    out_f32 = jax.block_until_ready(entity_disambiguation_head(x, params))
    assert out_f32.shape == (batch, seq, entity_embed_dim)
    assert jnp.allclose(out_f32, expected, atol=1e-5, rtol=1e-5)

    # Fast path: bf16 weights prepared ONCE, x cast to bf16 inside the kernel.
    fast_params = prepare_params(params, use_bf16=True)
    out_fast = jax.block_until_ready(
        entity_disambiguation_head(x, fast_params))
    assert out_fast.shape == (batch, seq, entity_embed_dim)
    assert jnp.allclose(out_fast, expected, atol=5e-2, rtol=5e-2)

    # Optional bf16 output (halves output writeback when downstream allows).
    out_bf16 = jax.block_until_ready(
        entity_disambiguation_head(x, fast_params, out_dtype=jnp.bfloat16))
    assert out_bf16.dtype == jnp.bfloat16
    assert jnp.allclose(out_bf16.astype(jnp.float32), expected,
                        atol=5e-2, rtol=5e-2)

    print("KERNEL_OK")
</pallas_src>

<mosaic_0001>
module attributes {stable_mosaic.version = 11 : i64} {
  func.func @_ed_head_kernel(%arg0: i32, %arg1: memref<16x32xf32, #tpu.memory_space<vmem>>, %arg2: memref<32x256xf32, #tpu.memory_space<vmem>>, %arg3: memref<1x256xf32, #tpu.memory_space<vmem>>, %arg4: memref<256x256xf32, #tpu.memory_space<vmem>>, %arg5: memref<1x256xf32, #tpu.memory_space<vmem>>, %arg6: memref<256x64xf32, #tpu.memory_space<vmem>>, %arg7: memref<1x64xf32, #tpu.memory_space<vmem>>, %arg8: memref<16x64xf32, #tpu.memory_space<vmem>>) attributes {dimension_semantics = [#tpu.dimension_semantics<parallel>], iteration_bounds = array<i64: 1>, scalar_prefetch = 0 : i64, scratch_operands = 0 : i64, tpu.core_type = #tpu.core_type<tc>, window_params = [{pipeline_mode = #tpu.pipeline_mode<double_buffered>, transform_indices = @transform_0, window_bounds = array<i64: 16, 32>}, {pipeline_mode = #tpu.pipeline_mode<synchronous>, transform_indices = @transform_1, window_bounds = array<i64: 32, 256>}, {pipeline_mode = #tpu.pipeline_mode<synchronous>, transform_indices = @transform_2, window_bounds = array<i64: 1, 256>}, {pipeline_mode = #tpu.pipeline_mode<synchronous>, transform_indices = @transform_3, window_bounds = array<i64: 256, 256>}, {pipeline_mode = #tpu.pipeline_mode<synchronous>, transform_indices = @transform_4, window_bounds = array<i64: 1, 256>}, {pipeline_mode = #tpu.pipeline_mode<synchronous>, transform_indices = @transform_5, window_bounds = array<i64: 256, 64>}, {pipeline_mode = #tpu.pipeline_mode<synchronous>, transform_indices = @transform_6, window_bounds = array<i64: 1, 64>}, {transform_indices = @transform_7, window_bounds = array<i64: 16, 64>}]} {
    %c0 = arith.constant 0 : index
    %c0_0 = arith.constant 0 : index
    %0 = vector.load %arg1[%c0, %c0_0] : memref<16x32xf32, #tpu.memory_space<vmem>>, vector<16x32xf32>
    %c0_1 = arith.constant 0 : index
    %c0_2 = arith.constant 0 : index
    %1 = vector.load %arg2[%c0_1, %c0_2] : memref<32x256xf32, #tpu.memory_space<vmem>>, vector<32x256xf32>
    %cst = arith.constant dense<0.000000e+00> : vector<16x256xf32>
    %2 = tpu.matmul %0, %1, %cst {dimension_numbers = #tpu.dot_dimension_numbers<[1], [0], [0], [1], [0, 0, 1, 1], [], []>} : vector<16x32xf32>, vector<32x256xf32>, vector<16x256xf32> -> vector<16x256xf32>
    %c0_3 = arith.constant 0 : index
    %c0_4 = arith.constant 0 : index
    %3 = vector.load %arg3[%c0_3, %c0_4] : memref<1x256xf32, #tpu.memory_space<vmem>>, vector<1x256xf32>
    %4 = vector.broadcast %3 : vector<1x256xf32> to vector<16x256xf32>
    %5 = arith.addf %2, %4 : vector<16x256xf32>
    %cst_5 = arith.constant 0.000000e+00 : f32
    %6 = vector.broadcast %cst_5 : f32 to vector<16x256xf32>
    %7 = arith.maximumf %5, %6 : vector<16x256xf32>
    %c0_6 = arith.constant 0 : index
    %c0_7 = arith.constant 0 : index
    %8 = vector.load %arg4[%c0_6, %c0_7] : memref<256x256xf32, #tpu.memory_space<vmem>>, vector<256x256xf32>
    %cst_8 = arith.constant dense<0.000000e+00> : vector<16x256xf32>
    %9 = tpu.matmul %7, %8, %cst_8 {dimension_numbers = #tpu.dot_dimension_numbers<[1], [0], [0], [1], [0, 0, 1, 1], [], []>} : vector<16x256xf32>, vector<256x256xf32>, vector<16x256xf32> -> vector<16x256xf32>
    %c0_9 = arith.constant 0 : index
    %c0_10 = arith.constant 0 : index
    %10 = vector.load %arg5[%c0_9, %c0_10] : memref<1x256xf32, #tpu.memory_space<vmem>>, vector<1x256xf32>
    %11 = vector.broadcast %10 : vector<1x256xf32> to vector<16x256xf32>
    %12 = arith.addf %9, %11 : vector<16x256xf32>
    %cst_11 = arith.constant 0.000000e+00 : f32
    %13 = vector.broadcast %cst_11 : f32 to vector<16x256xf32>
    %14 = arith.maximumf %12, %13 : vector<16x256xf32>
    %c0_12 = arith.constant 0 : index
    %c0_13 = arith.constant 0 : index
    %15 = vector.load %arg6[%c0_12, %c0_13] : memref<256x64xf32, #tpu.memory_space<vmem>>, vector<256x64xf32>
    %cst_14 = arith.constant dense<0.000000e+00> : vector<16x64xf32>
    %16 = tpu.matmul %14, %15, %cst_14 {dimension_numbers = #tpu.dot_dimension_numbers<[1], [0], [0], [1], [0, 0, 1, 1], [], []>} : vector<16x256xf32>, vector<256x64xf32>, vector<16x64xf32> -> vector<16x64xf32>
    %c0_15 = arith.constant 0 : index
    %c0_16 = arith.constant 0 : index
    %17 = vector.load %arg7[%c0_15, %c0_16] : memref<1x64xf32, #tpu.memory_space<vmem>>, vector<1x64xf32>
    %18 = vector.broadcast %17 : vector<1x64xf32> to vector<16x64xf32>
    %19 = arith.addf %16, %18 : vector<16x64xf32>
    %20 = math.tanh %19 : vector<16x64xf32>
    %c0_17 = arith.constant 0 : index
    %c0_18 = arith.constant 0 : index
    %21 = vector.load %arg8[%c0_17, %c0_18] : memref<16x64xf32, #tpu.memory_space<vmem>>, vector<16x64xf32>
    tpu.vector_store %arg8[%c0_17, %c0_18], %20 {strides = array<i32>} : memref<16x64xf32, #tpu.memory_space<vmem>>, vector<16x64xf32>,
    return
  }
  func.func @transform_0(%arg0: i32) -> (i32, i32) {
    %c0_i32 = arith.constant 0 : i32
    %c0_i32_0 = arith.constant 0 : i32
    return %arg0, %c0_i32 : i32, i32
  }
  func.func @transform_1(%arg0: i32) -> (i32, i32) {
    %c0_i32 = arith.constant 0 : i32
    %c0_i32_0 = arith.constant 0 : i32
    %c0_i32_1 = arith.constant 0 : i32
    return %c0_i32, %c0_i32_0 : i32, i32
  }
  func.func @transform_2(%arg0: i32) -> (i32, i32) {
    %c0_i32 = arith.constant 0 : i32
    %c0_i32_0 = arith.constant 0 : i32
    %c0_i32_1 = arith.constant 0 : i32
    return %c0_i32, %c0_i32_0 : i32, i32
  }
  func.func @transform_3(%arg0: i32) -> (i32, i32) {
    %c0_i32 = arith.constant 0 : i32
    %c0_i32_0 = arith.constant 0 : i32
    %c0_i32_1 = arith.constant 0 : i32
    return %c0_i32, %c0_i32_0 : i32, i32
  }
  func.func @transform_4(%arg0: i32) -> (i32, i32) {
    %c0_i32 = arith.constant 0 : i32
    %c0_i32_0 = arith.constant 0 : i32
    %c0_i32_1 = arith.constant 0 : i32
    return %c0_i32, %c0_i32_0 : i32, i32
  }
  func.func @transform_5(%arg0: i32) -> (i32, i32) {
    %c0_i32 = arith.constant 0 : i32
    %c0_i32_0 = arith.constant 0 : i32
    %c0_i32_1 = arith.constant 0 : i32
    return %c0_i32, %c0_i32_0 : i32, i32
  }
  func.func @transform_6(%arg0: i32) -> (i32, i32) {
    %c0_i32 = arith.constant 0 : i32
    %c0_i32_0 = arith.constant 0 : i32
    %c0_i32_1 = arith.constant 0 : i32
    return %c0_i32, %c0_i32_0 : i32, i32
  }
  func.func @transform_7(%arg0: i32) -> (i32, i32) {
    %c0_i32 = arith.constant 0 : i32
    %c0_i32_0 = arith.constant 0 : i32
    return %arg0, %c0_i32 : i32, i32
  }
}

</mosaic_0001>

<bundles_post_ra>
// kernel: entity_disambiguation_head.1
= control target key start
LH: loop header
LB: loop body
LE: loop exit
PB: predicated region body
PF: predicated region fallthrough
CT: control target
= control target key end

     0   :  { %12 = vsyncpa [#allocation3], 0  ;;  %s646_s0 = inlined_call_operand.vmem [shape: f32[16,32], index: 0, kind: input, shape index: {}]   ;;  %s647_s1 = inlined_call_operand.vmem [shape: f32[32,256], index: 1, kind: input, shape index: {}]   ;;  %s648_s2 = inlined_call_operand.vmem [shape: f32[1,256], index: 2, kind: input, shape index: {}]   ;;  %s649_s3 = inlined_call_operand.hbm [shape: f32[256,256], index: 3, kind: input, shape index: {}]   ;;  %s650_s4 = inlined_call_operand.vmem [shape: f32[1,256], index: 4, kind: input, shape index: {}]   ;;  %s651_s5 = inlined_call_operand.vmem [shape: f32[256,64], index: 5, kind: input, shape index: {}]   ;;  %s652_s6 = inlined_call_operand.vmem [shape: f32[1,64], index: 6, kind: input, shape index: {}]   ;;  %s653_s7 = inlined_call_operand.hbm [shape: f32[16,64], index: 7, kind: output, shape index: {}]  }
   0x1   :  { %13 = vsyncpa [#allocation4], 0  ;;  %s24_s26 = sshll.u32 %s649_s3, 4  ;;  %s455_s27 = smov [#allocation2]   ;;  %s25_s26 = int_to_ptr.hbm [resolvable:$true] %s24_s26 }
   0x2   :  { %s26_s28 = sshll.u32 %s455_s27, 4  ;;  %s456_s29 = smov 256   ;;  %s27_s28 = int_to_ptr.vmem [resolvable:$true] %s26_s28 }
   0x3   :  { %s457_s30 = smov 16  }
   0x4   :  { %32 = dma.hbm_to_vmem [thread:$0]  %s25_s26, 8192, %s27_s28, [#allocation3], %s456_s29, %s456_s29, %s457_s30  }
   0x5   :  { %451 = dma.done.wait [#allocation3], 8192  }
   0x6   :  { %452 = vsyncadd [#allocation3], 4294959104  ;;  %v51_v0 = vld [vmem:[%s647_s1 + $0x30] sm:$0xff]  ;;  %v49_v1 = vld [vmem:[%s647_s1 + $0x20] sm:$0xff]  ;;  %vm59_vm0 = vcmask 261120   ;;  %vm366_vm1 = vcmask 523264  }
   0x7   :  { %v52_v2 = vld [vmem:[%s647_s1 + $0x38] sm:$0xff]  ;;  %78 = vmatpush.msra.mxu0 %v51_v0  ;;  %v50_v3 = vld [vmem:[%s647_s1 + $0x28] sm:$0xff]  ;;  %v47_v4 = vld [vmem:[%s647_s1 + $0x10] sm:$0xff]  ;;  %s458_s15 = smov [#allocation5]   ;;  %s375_s19 = sshll.u32 %s653_s7, 4  ;;  %s376_s19 = int_to_ptr.hbm [resolvable:$true] %s375_s19 }
   0x8   :  { %101 = vmatpush.msra.mxu1 %v52_v2  ;;  %v48_v5 = vld [vmem:[%s647_s1 + $0x18] sm:$0xff]  ;;  %v45_v6 = vld [vmem:[%s647_s1] sm:$0xff]  ;;  %v146_v7 = vld [vmem:[#allocation2 + $0xf0] sm:$0xff]  ;;  %s373_s16 = sshll.u32 %s458_s15, 4  ;;  %s460_s20 = smov 8   ;;  %s374_s16 = int_to_ptr.vmem [resolvable:$true] %s373_s16 }
   0x9   :  { %79 = vmatpush.msra.mxu0 %v49_v1  ;;  %v46_v8 = vld [vmem:[%s647_s1 + $0x8] sm:$0xff]  ;;  %186 = vmatpush.msra.mxu2 %v146_v7  ;;  %v144_v9 = vld [vmem:[#allocation2 + $0xe0] sm:$0xff]  ;;  %v178_v10 = vld [vmem:[#allocation2 + $0x1f0] sm:$0xff] }
   0xa   :  { %102 = vmatpush.msra.mxu1 %v50_v3  ;;  %v43_v11 = vld [vmem:[%s646_s0] sm:$0xff]  ;;  %v147_v12 = vld [vmem:[#allocation2 + $0xf8] sm:$0xff]  ;;  %209 = vmatpush.msra.mxu3 %v178_v10  ;;  %v142_v14 = vld [vmem:[#allocation2 + $0xd0] sm:$0xff] }
   0xb   :  { %80 = vmatpush.msra.mxu0 %v47_v4  ;;  %187 = vmatpush.msra.mxu2 %v144_v9  ;;  %v179_v13 = vld [vmem:[#allocation2 + $0x1f8] sm:$0xff]  ;;  %v176_v15 = vld [vmem:[#allocation2 + $0x1e0] sm:$0xff]  ;;  %v145_v16 = vld [vmem:[#allocation2 + $0xe8] sm:$0xff] }
   0xc   :  { %103 = vmatpush.msra.mxu1 %v48_v5  ;;  %v177_v17 = vld [vmem:[#allocation2 + $0x1e8] sm:$0xff]  ;;  %v140_v18 = vld [vmem:[#allocation2 + $0xc0] sm:$0xff]  ;;  %v174_v19 = vld [vmem:[#allocation2 + $0x1d0] sm:$0xff]  ;;  %210 = vmatpush.msra.mxu3 %v176_v15 }
   0xd   :  { %81 = vmatpush.msra.mxu0 %v45_v6  ;;  %188 = vmatpush.msra.mxu2 %v142_v14  ;;  %v143_v20 = vld [vmem:[#allocation2 + $0xd8] sm:$0xff]  ;;  %v138_v22 = vld [vmem:[#allocation2 + $0xb0] sm:$0xff]  ;;  %v172_v23 = vld [vmem:[#allocation2 + $0x1c0] sm:$0xff] }
   0xe   :  { %104 = vmatpush.msra.mxu1 %v46_v8  ;;  %388 = vmatmul.msk.f32.vlgmr.msra.gmra.mxu0 %vm59_vm0, %v43_v11  ;;  %v175_v21 = vld [vmem:[#allocation2 + $0x1d8] sm:$0xff]  ;;  %v141_v24 = vld [vmem:[#allocation2 + $0xc8] sm:$0xff]  ;;  %v136_v28 = vld [vmem:[#allocation2 + $0xa0] sm:$0xff] }
   0xf   :  { %390 = vmatmul.msk.f32.vlgmr.msra.gmra.mxu1 %vm59_vm0, %v43_v11  ;;  %232 = vmatpush.msrb.mxu0 %v147_v12  ;;  %v173_v25 = vld [vmem:[#allocation2 + $0x1c8] sm:$0xff]  ;;  %v139_v27 = vld [vmem:[#allocation2 + $0xb8] sm:$0xff]  ;;  %v170_v29 = vld [vmem:[#allocation2 + $0x1b0] sm:$0xff] }
  0x10   :  { %255 = vmatpush.msrb.mxu1 %v179_v13  ;;  %189 = vmatpush.msra.mxu2 %v140_v18  ;;  %v44_v26 = vld [vmem:[%s646_s0 + $0x8] sm:$0xff]  ;;  %v171_v30 = vld [vmem:[#allocation2 + $0x1b8] sm:$0xff]  ;;  %v134_v32 = vld [vmem:[#allocation2 + $0x90] sm:$0xff] }
  0x11   :  { %233 = vmatpush.msrb.mxu0 %v145_v16  ;;  %211 = vmatpush.msra.mxu3 %v174_v19  ;;  %v137_v31 = vld [vmem:[#allocation2 + $0xa8] sm:$0xff]  ;;  %v168_v33 = vld [vmem:[#allocation2 + $0x1a0] sm:$0xff]  ;;  %v135_v35 = vld [vmem:[#allocation2 + $0x98] sm:$0xff] }
  0x12   :  { %256 = vmatpush.msrb.mxu1 %v177_v17  ;;  %190 = vmatpush.msra.mxu2 %v138_v22  ;;  %v169_v34 = vld [vmem:[#allocation2 + $0x1a8] sm:$0xff]  ;;  %v132_v36 = vld [vmem:[#allocation2 + $0x80] sm:$0xff]  ;;  %v166_v37 = vld [vmem:[#allocation2 + $0x190] sm:$0xff] }
  0x13   :  { %234 = vmatpush.msrb.mxu0 %v143_v20  ;;  %212 = vmatpush.msra.mxu3 %v172_v23  ;;  %v167_v38 = vld [vmem:[#allocation2 + $0x198] sm:$0xff]  ;;  %v133_v39 = vld [vmem:[#allocation2 + $0x88] sm:$0xff]  ;;  %v130_v40 = vld [vmem:[#allocation2 + $0x70] sm:$0xff] }
  0x14   :  { %257 = vmatpush.msrb.mxu1 %v175_v21  ;;  %191 = vmatpush.msra.mxu2 %v136_v28  ;;  %v164_v41 = vld [vmem:[#allocation2 + $0x180] sm:$0xff]  ;;  %v165_v42 = vld [vmem:[#allocation2 + $0x188] sm:$0xff]  ;;  %v131_v43 = vld [vmem:[#allocation2 + $0x78] sm:$0xff] }
  0x15   :  { %235 = vmatpush.msrb.mxu0 %v141_v24  ;;  %213 = vmatpush.msra.mxu3 %v170_v29  ;;  %v128_v44 = vld [vmem:[#allocation2 + $0x60] sm:$0xff]  ;;  %v162_v45 = vld [vmem:[#allocation2 + $0x170] sm:$0xff]  ;;  %v163_v46 = vld [vmem:[#allocation2 + $0x178] sm:$0xff] }
  0x16   :  { %258 = vmatpush.msrb.mxu1 %v173_v25  ;;  %389 = vmatmul.msk.f32.gmra.mxu0 %vm59_vm0, %v44_v26  ;;  %v129_v47 = vld [vmem:[#allocation2 + $0x68] sm:$0xff]  ;;  %v126_v48 = vld [vmem:[#allocation2 + $0x50] sm:$0xff]  ;;  %v160_v49 = vld [vmem:[#allocation2 + $0x160] sm:$0xff] }
  0x17   :  { %391 = vmatmul.msk.f32.gmra.mxu1 %vm59_vm0, %v44_v26  ;;  %236 = vmatpush.msrb.mxu0 %v139_v27  ;;  %v161_v50 = vld [vmem:[#allocation2 + $0x168] sm:$0xff]  ;;  %v127_v51 = vld [vmem:[#allocation2 + $0x58] sm:$0xff]  ;;  %v124_v52 = vld [vmem:[#allocation2 + $0x40] sm:$0xff] }
  0x18   :  { %259 = vmatpush.msrb.mxu1 %v171_v30  ;;  %192 = vmatpush.msra.mxu2 %v134_v32  ;;  %v158_v53 = vld [vmem:[#allocation2 + $0x150] sm:$0xff]  ;;  %v159_v54 = vld [vmem:[#allocation2 + $0x158] sm:$0xff]  ;;  %v125_v55 = vld [vmem:[#allocation2 + $0x48] sm:$0xff] }
  0x19   :  { %237 = vmatpush.msrb.mxu0 %v137_v31  ;;  %214 = vmatpush.msra.mxu3 %v168_v33  ;;  %v122_v56 = vld [vmem:[#allocation2 + $0x30] sm:$0xff]  ;;  %v156_v57 = vld [vmem:[#allocation2 + $0x140] sm:$0xff]  ;;  %v157_v58 = vld [vmem:[#allocation2 + $0x148] sm:$0xff] }
  0x1a   :  { %260 = vmatpush.msrb.mxu1 %v169_v34  ;;  %193 = vmatpush.msra.mxu2 %v132_v36  ;;  %v123_v59 = vld [vmem:[#allocation2 + $0x38] sm:$0xff]  ;;  %v120_v60 = vld [vmem:[#allocation2 + $0x20] sm:$0xff]  ;;  %v154_v61 = vld [vmem:[#allocation2 + $0x130] sm:$0xff] }
  0x1b   :  { %238 = vmatpush.msrb.mxu0 %v135_v35  ;;  %215 = vmatpush.msra.mxu3 %v166_v37  ;;  %v121_v62 = vld [vmem:[#allocation2 + $0x28] sm:$0xff]  ;;  %v155_v63 = vld [vmem:[#allocation2 + $0x138] sm:$0xff]  ;;  %v118_v0 = vld [vmem:[#allocation2 + $0x10] sm:$0xff] }
  0x1c   :  { %261 = vmatpush.msrb.mxu1 %v167_v38  ;;  %194 = vmatpush.msra.mxu2 %v130_v40  ;;  %v152_v1 = vld [vmem:[#allocation2 + $0x120] sm:$0xff]  ;;  %v119_v2 = vld [vmem:[#allocation2 + $0x18] sm:$0xff]  ;;  %v153_v3 = vld [vmem:[#allocation2 + $0x128] sm:$0xff] }
  0x1d   :  { %239 = vmatpush.msrb.mxu0 %v133_v39  ;;  %216 = vmatpush.msra.mxu3 %v164_v41  ;;  %v116_v4 = vld [vmem:[#allocation2] sm:$0xff]  ;;  %v150_v5 = vld [vmem:[#allocation2 + $0x110] sm:$0xff]  ;;  %v117_v6 = vld [vmem:[#allocation2 + $0x8] sm:$0xff] }
  0x1e   :  { %262 = vmatpush.msrb.mxu1 %v165_v42  ;;  %195 = vmatpush.msra.mxu2 %v128_v44  ;;  %v151_v7 = vld [vmem:[#allocation2 + $0x118] sm:$0xff]  ;;  %v148_v8 = vld [vmem:[#allocation2 + $0x100] sm:$0xff]  ;;  %v149_v9 = vld [vmem:[#allocation2 + $0x108] sm:$0xff] }
  0x1f   :  { %240 = vmatpush.msrb.mxu0 %v131_v43  ;;  %217 = vmatpush.msra.mxu3 %v162_v45  ;;  %v313_v10 = vld [vmem:[%s651_s5 + $0xf8] sm:$0xff]  ;;  %v312_v11 = vld [vmem:[%s651_s5 + $0xf0] sm:$0xff]  ;;  %v311_v14 = vld [vmem:[%s651_s5 + $0xe8] sm:$0xff] }
  0x20   :  { %263 = vmatpush.msrb.mxu1 %v163_v46  ;;  %196 = vmatpush.msra.mxu2 %v126_v48  ;;  %v297_v12 = vld [vmem:[%s651_s5 + $0x78] sm:$0xff]  ;;  %v296_v13 = vld [vmem:[%s651_s5 + $0x70] sm:$0xff]  ;;  %v295_v15 = vld [vmem:[%s651_s5 + $0x68] sm:$0xff] }
  0x21   :  { %241 = vmatpush.msrb.mxu0 %v129_v47  ;;  %218 = vmatpush.msra.mxu3 %v160_v49  ;;  %v310_v16 = vld [vmem:[%s651_s5 + $0xe0] sm:$0xff]  ;;  %v309_v18 = vld [vmem:[%s651_s5 + $0xd8] sm:$0xff]  ;;  %v308_v20 = vld [vmem:[%s651_s5 + $0xd0] sm:$0xff] }
  0x22   :  { %264 = vmatpush.msrb.mxu1 %v161_v50  ;;  %197 = vmatpush.msra.mxu2 %v124_v52  ;;  %v294_v17 = vld [vmem:[%s651_s5 + $0x60] sm:$0xff]  ;;  %v293_v19 = vld [vmem:[%s651_s5 + $0x58] sm:$0xff]  ;;  %v292_v21 = vld [vmem:[%s651_s5 + $0x50] sm:$0xff] }
  0x23   :  { %242 = vmatpush.msrb.mxu0 %v127_v51  ;;  %219 = vmatpush.msra.mxu3 %v158_v53  ;;  %v307_v22 = vld [vmem:[%s651_s5 + $0xc8] sm:$0xff]  ;;  %v53_v24 = vld [vmem:[%s648_s2] sm:$0x3]  ;;  %v305_v27 = vld [vmem:[%s651_s5 + $0xb8] sm:$0xff] }
  0x24   :  { %265 = vmatpush.msrb.mxu1 %v159_v54  ;;  %198 = vmatpush.msra.mxu2 %v122_v56  ;;  %v291_v23 = vld [vmem:[%s651_s5 + $0x48] sm:$0xff]  ;;  %v306_v25 = vld [vmem:[%s651_s5 + $0xc0] sm:$0xff]  ;;  %v55_v28 = vperm.slane %v53_v24, 0  ;;  %v56_v29 = vperm.slane %v53_v24, 1  ;;  %v289_v30 = vld [vmem:[%s651_s5 + $0x38] sm:$0xff] }
  0x25   :  { %243 = vmatpush.msrb.mxu0 %v125_v55  ;;  %220 = vmatpush.msra.mxu3 %v156_v57  ;;  %v290_v26 = vld [vmem:[%s651_s5 + $0x40] sm:$0xff]  ;;  %v304_v31 = vld [vmem:[%s651_s5 + $0xb0] sm:$0xff]  ;;  %v303_v34 = vld [vmem:[%s651_s5 + $0xa8] sm:$0xff] }
  0x26   :  { %266 = vmatpush.msrb.mxu1 %v157_v58  ;;  %199 = vmatpush.msra.mxu2 %v120_v60  ;;  %v302_v39 = vld [vmem:[%s651_s5 + $0xa0] sm:$0xff]  ;;  %v288_v46 = vld [vmem:[%s651_s5 + $0x30] sm:$0xff]  ;;  %v301_v47 = vld [vmem:[%s651_s5 + $0x98] sm:$0xff] }
  0x27   :  { %244 = vmatpush.msrb.mxu0 %v123_v59  ;;  %221 = vmatpush.msra.mxu3 %v154_v61  ;;  %v287_v48 = vld [vmem:[%s651_s5 + $0x28] sm:$0xff]  ;;  %v300_v49 = vld [vmem:[%s651_s5 + $0x90] sm:$0xff]  ;;  %v286_v50 = vld [vmem:[%s651_s5 + $0x20] sm:$0xff] }
  0x28   :  { %267 = vmatpush.msrb.mxu1 %v155_v63  ;;  %200 = vmatpush.msra.mxu2 %v118_v0  ;;  %v299_v51 = vld [vmem:[%s651_s5 + $0x88] sm:$0xff]  ;;  %v285_v52 = vld [vmem:[%s651_s5 + $0x18] sm:$0xff]  ;;  %v298_v53 = vld [vmem:[%s651_s5 + $0x80] sm:$0xff] }
  0x29   :  { %245 = vmatpush.msrb.mxu0 %v121_v62  ;;  %222 = vmatpush.msra.mxu3 %v152_v1  ;;  %v284_v54 = vld [vmem:[%s651_s5 + $0x10] sm:$0xff]  ;;  %v283_v55 = vld [vmem:[%s651_s5 + $0x8] sm:$0xff]  ;;  %v282_v56 = vld [vmem:[%s651_s5] sm:$0xff] }
  0x2a   :  { %268 = vmatpush.msrb.mxu1 %v153_v3  ;;  %201 = vmatpush.msra.mxu2 %v116_v4  ;;  %v180_v57 = vld [vmem:[%s650_s4] sm:$0x3] }
  0x2b   :  { %246 = vmatpush.msrb.mxu0 %v119_v2  ;;  %223 = vmatpush.msra.mxu3 %v150_v5  ;;  %v183_v58 = vperm.slane %v180_v57, 1  ;;  %v182_v63 = vperm.slane %v180_v57, 0 }
  0x2c   :  { %269 = vmatpush.msrb.mxu1 %v151_v7  ;;  %318 = vmatpush.msrb.mxu2 %v297_v12 }
  0x2d   :  { %247 = vmatpush.msrb.mxu0 %v117_v6  ;;  %224 = vmatpush.msra.mxu3 %v148_v8 }
  0x2e   :  { %270 = vmatpush.msrb.mxu1 %v149_v9  ;;  %319 = vmatpush.msrb.mxu2 %v296_v13 }
  0x2f   :  { %341 = vmatpush.msrb.mxu3 %v313_v10 }
  0x30   :  { %320 = vmatpush.msrb.mxu2 %v295_v15 }
  0x31   :  { %342 = vmatpush.msrb.mxu3 %v312_v11 }
  0x32   :  { %321 = vmatpush.msrb.mxu2 %v294_v17 }
  0x33   :  { %343 = vmatpush.msrb.mxu3 %v311_v14 }
  0x34   :  { %322 = vmatpush.msrb.mxu2 %v293_v19 }
  0x35   :  { %344 = vmatpush.msrb.mxu3 %v310_v16  ;;  %v398_v16 = vld [vmem:[%s652_s6] ss:$0 sm:$0xff]  ;;  %s459_s6 = smov 128  }
  0x36   :  { %323 = vmatpush.msrb.mxu2 %v292_v21 }
  0x37   :  { %345 = vmatpush.msrb.mxu3 %v309_v18 }
  0x38   :  { %324 = vmatpush.msrb.mxu2 %v291_v23 }
  0x39   :  { %346 = vmatpush.msrb.mxu3 %v308_v20 }
  0x3a   :  { %325 = vmatpush.msrb.mxu2 %v290_v26 }
  0x3b   :  { %347 = vmatpush.msrb.mxu3 %v307_v22 }
  0x3c   :  { %326 = vmatpush.msrb.mxu2 %v289_v30 }
  0x3d   :  { %348 = vmatpush.msrb.mxu3 %v306_v25 }
  0x3e   :  { %327 = vmatpush.msrb.mxu2 %v288_v46 }
  0x3f   :  { %349 = vmatpush.msrb.mxu3 %v305_v27 }
  0x40   :  { %328 = vmatpush.msrb.mxu2 %v287_v48 }
  0x41   :  { %350 = vmatpush.msrb.mxu3 %v304_v31 }
  0x42   :  { %329 = vmatpush.msrb.mxu2 %v286_v50 }
  0x43   :  { %351 = vmatpush.msrb.mxu3 %v303_v34 }
  0x44   :  { %330 = vmatpush.msrb.mxu2 %v285_v52 }
  0x45   :  { %352 = vmatpush.msrb.mxu3 %v302_v39 }
  0x46   :  { %331 = vmatpush.msrb.mxu2 %v284_v54 }
  0x47   :  { %353 = vmatpush.msrb.mxu3 %v301_v47 }
  0x48   :  { %332 = vmatpush.msrb.mxu2 %v283_v55 }
  0x49   :  { %354 = vmatpush.msrb.mxu3 %v300_v49 }
  0x4a   :  { %333 = vmatpush.msrb.mxu2 %v282_v56 }
  0x4b   :  { %355 = vmatpush.msrb.mxu3 %v299_v51 }
  0x4d   :  { %356 = vmatpush.msrb.mxu3 %v298_v53 }
  0x8b   :  { %v83_v32 = vpop.f32.mrf.mxu0 }
  0x8c   :  { %v106_v33 = vpop.f32.mrf.mxu1  ;;  %v84_v35 = vadd.f32 %v83_v32, %v55_v28 }
  0x8d   :  { %v107_v36 = vadd.f32 %v106_v33, %v56_v29 }
  0x8e   :  { %v112_v37 = vmax.f32 %v84_v35, 0.0 }
  0x8f   :  { %v113_v38 = vmax.f32 %v107_v36, 0.0 }
  0x90   :  { %202 = vmatmul.f32.vlgmr.msra.gmra.mxu2 %v112_v37  ;;  %248 = vmatmul.f32.vlgmr.msrb.gmra.mxu0 %v112_v37 }
  0x91   :  { %225 = vmatmul.f32.vlgmr.msra.gmra.mxu3 %v113_v38  ;;  %271 = vmatmul.f32.vlgmr.msrb.gmra.mxu1 %v113_v38 }
  0x93   :  { %v86_v40 = vpop.f32.mrf.mxu0 }
  0x94   :  { %v109_v41 = vpop.f32.mrf.mxu1  ;;  %v87_v42 = vadd.f32 %v86_v40, %v55_v28 }
  0x95   :  { %v110_v43 = vadd.f32 %v109_v41, %v56_v29 }
  0x96   :  { %v114_v44 = vmax.f32 %v87_v42, 0.0 }
  0x97   :  { %v115_v45 = vmax.f32 %v110_v43, 0.0 }
  0x98   :  { %205 = vmatmul.f32.gmra.mxu2 %v114_v44  ;;  %251 = vmatmul.f32.gmra.mxu0 %v114_v44 }
  0x99   :  { %228 = vmatmul.f32.gmra.mxu3 %v115_v45  ;;  %274 = vmatmul.f32.gmra.mxu1 %v115_v45 }
 0x10d   :  { %v249_v59 = vpop.f32.mrf.mxu0 }
 0x10e   :  { %v250_v60 = vadd.f32 %v249_v59, %v183_v58  ;;  %v272_v61 = vpop.f32.mrf.mxu1 }
 0x110   :  { %v273_v62 = vadd.f32 %v272_v61, %v250_v60 }
 0x112   :  { %v279_v0 = vmax.f32 %v273_v62, 0.0 }
 0x113   :  { %v203_v1 = vpop.f32.mrf.mxu2 }
 0x114   :  { %v204_v2 = vadd.f32 %v203_v1, %v182_v63  ;;  %357 = vmatmul.f32.vlgmr.msrb.gmra.mxu3 %v279_v0  ;;  %v226_v3 = vpop.f32.mrf.mxu3 }
 0x115   :  { %v252_v4 = vpop.f32.mrf.mxu0 }
 0x116   :  { %v227_v5 = vadd.f32 %v226_v3, %v204_v2  ;;  %v253_v6 = vadd.f32 %v252_v4, %v183_v58  ;;  %v275_v7 = vpop.f32.mrf.mxu1 }
 0x118   :  { %v278_v8 = vmax.f32 %v227_v5, 0.0  ;;  %v276_v9 = vadd.f32 %v275_v7, %v253_v6 }
 0x11a   :  { %v281_v10 = vmax.f32 %v276_v9, 0.0  ;;  %334 = vmatmul.f32.vlgmr.msrb.gmra.mxu2 %v278_v8 }
 0x11b   :  { %v206_v11 = vpop.f32.mrf.mxu2 }
 0x11c   :  { %v207_v12 = vadd.f32 %v206_v11, %v182_v63  ;;  %360 = vmatmul.f32.gmra.mxu3 %v281_v10  ;;  %v229_v13 = vpop.f32.mrf.mxu3 }
 0x11e   :  { %v230_v14 = vadd.f32 %v229_v13, %v207_v12 }
 0x120   :  { %v280_v15 = vmax.f32 %v230_v14, 0.0 }
 0x122   :  { %337 = vmatmul.f32.gmra.mxu2 %v280_v15 }
 0x197   :  { %v358_v17 = vpop.f32.mrf.mxu3 }
 0x19d   :  { %v335_v18 = vpop.f32.mrf.mxu2 }
 0x19e   :  { %v336_v19 = vadd.f32 %v398_v16, %v335_v18 }
 0x19f   :  { %v361_v23 = vpop.f32.mrf.mxu3 }
 0x1a0   :  { %v359_v20 = vadd.f32 %v358_v17, %v336_v19 }
 0x1a2   :  { %399 = vtanh.f32 %v359_v20 }
 0x1a5   :  { %v338_v21 = vpop.f32.mrf.mxu2 }
 0x1a6   :  { %v339_v22 = vadd.f32 %v398_v16, %v338_v21 }
 0x1a8   :  { %v400_v24 = vpop.eup %399  ;;  %v362_v25 = vadd.f32 %v361_v23, %v339_v22 }
 0x1a9   :  { %367 = vst.msk [vmem:[#allocation5] sm:$0xff] %vm366_vm1, %v400_v24 }
 0x1aa   :  { %401 = vtanh.f32 %v362_v25 }
 0x1b0   :  { %v402_v26 = vpop.eup %401 }
 0x1b1   :  { %368 = vst.msk [vmem:[#allocation5 + $0x8] sm:$0xff] %vm366_vm1, %v402_v26 }
 0x1b2   :  { %381 = dma.vmem_to_hbm [thread:$0]  %s374_s16, 256, %s376_s19, [#allocation4], %s459_s6, %s459_s6, %s460_s20  }
 0x1b3   :  { %453 = dma.done.wait [#allocation4], 256  }
 0x1b4   :  { %454 = vsyncadd [#allocation4], 4294967040 }
 0x1b5   :  { %386 = vsyncpa [#allocation3], 1 }
 0x1b6   :  { %387 = vsyncpa [#allocation4], 1 }

</bundles_post_ra>
